<compile_context>
chip_gen: v5e
topology: v5e:2x2
jax: 0.10.0
libtpu: 0.0.40
codegen_flags: <defaults>
</compile_context>

<pallas_src>
import functools

import jax
import jax.numpy as jnp
from jax.experimental import pallas as pl
from jax.experimental.pallas import tpu as pltpu

MIN_NORM = 1e-15
MIN_SQ = MIN_NORM * MIN_NORM          # clamp on squared norms (representable f32)
EPS_F32 = 4e-3                        # PoincareBall.eps[torch.float32]
LANE = 128


def _vmem_limit_bytes():
    # ~75% of per-core VMEM, capped at 100 MiB, never below the old 32 MiB.
    try:
        cap = int(pltpu.get_tpu_info().vmem_capacity_bytes)
    except Exception:
        cap = 64 * 1024 * 1024
    return max(32 * 1024 * 1024, min((cap * 3) // 4, 100 * 1024 * 1024))


# ---------------------------- reciprocal helpers ------------------------------

def _recip_vpu(x):
    # Plain division — usable outside Pallas traces (wrapper-side bias precompute).
    return 1.0 / x


def _recip_eup(x):
    # EUP reciprocal inside kernels (frees VALU slots).
    return pl.reciprocal(x, approx=False)


# ------------------- Poincare-ball math (traced in kernels) -------------------

def _artanh(x):
    # clip margin representable in f32 (reference clips at 1-1e-15 which rounds
    # to 1.0 in f32); inputs are pre-projected so this never changes results.
    x = jnp.clip(x, -1.0 + 1e-7, 1.0 - 1e-7)
    return 0.5 * (jnp.log(1.0 + x) - jnp.log(1.0 - x))


def _tanh(x):
    return jnp.tanh(jnp.clip(x, -15.0, 15.0))


def _proj(x, c, x_sq=None, recip=_recip_vpu):
    if x_sq is None:
        x_sq = jnp.sum(x * x, axis=-1, keepdims=True)
    norm = jnp.sqrt(jnp.maximum(x_sq, MIN_SQ))
    maxnorm = (1.0 - EPS_F32) / (c ** 0.5)
    scaled = x * (maxnorm * recip(norm))
    return jnp.where(norm > maxnorm, scaled, x)


def _expmap0(u, c, u_sq=None, recip=_recip_vpu):
    sqrt_c = c ** 0.5
    if u_sq is None:
        u_sq = jnp.sum(u * u, axis=-1, keepdims=True)
    u_norm = jnp.sqrt(jnp.maximum(u_sq, MIN_SQ))
    gamma = _tanh(sqrt_c * u_norm) * recip(sqrt_c * u_norm)
    return gamma * u


def _logmap0(p, c, p_sq=None, recip=_recip_vpu):
    sqrt_c = c ** 0.5
    if p_sq is None:
        p_sq = jnp.sum(p * p, axis=-1, keepdims=True)
    p_norm = jnp.sqrt(jnp.maximum(p_sq, MIN_SQ))
    s = sqrt_c * p_norm
    return _artanh(s) * recip(s) * p


def _mobius_add(x, y, c, recip=_recip_vpu):
    x2 = jnp.sum(x * x, axis=-1, keepdims=True)
    y2 = jnp.sum(y * y, axis=-1, keepdims=True)
    xy = jnp.sum(x * y, axis=-1, keepdims=True)
    num = (1.0 + 2.0 * c * xy + c * y2) * x + (1.0 - c * x2) * y
    denom = 1.0 + 2.0 * c * xy + c * c * x2 * y2
    return num * recip(jnp.maximum(denom, MIN_NORM))


# ------------------------------- Pallas kernels --------------------------------

def _linear_kernel(x_ref, wt_ref, b_ref, xt_ref, *, c, encode, c_enc):
    """Rows tiled. (optional expmap0 encode) -> HypLinear -> bias -> logmap0."""
    recip = _recip_eup
    x = x_ref[...]                                     # (TML, Din_p) f32
    if encode:
        # x_hyp = proj(expmap0(proj_tan0(x, c0), c0), c0); proj_tan0 == identity.
        x = _proj(_expmap0(x, c_enc, recip=recip), c_enc, recip=recip)

    sqrt_c = c ** 0.5

    # ---- HypLinear.mobius_matvec(W, x) (bf16 MXU, f32 accumulation) ----
    x_sq = jnp.sum(x * x, axis=-1, keepdims=True)
    x_norm = jnp.sqrt(jnp.maximum(x_sq, MIN_SQ))
    mx = jnp.dot(x.astype(jnp.bfloat16), wt_ref[...],
                 preferred_element_type=jnp.float32)   # (TML, Dout_p)
    mx_sq = jnp.sum(mx * mx, axis=-1, keepdims=True)
    mx_norm = jnp.sqrt(jnp.maximum(mx_sq, MIN_SQ))
    scale = _tanh(mx_norm * recip(x_norm) * _artanh(sqrt_c * x_norm)) \
        * recip(mx_norm * sqrt_c)
    # all-zero-row condition derived from the squared norm (robust to bf16 feed)
    res = jnp.where(mx_sq == 0.0, 0.0, scale * mx)
    res_sq = jnp.where(mx_sq == 0.0, 0.0, scale * scale * mx_sq)  # reuse norm
    h = _proj(res, c, x_sq=res_sq, recip=recip)

    # ---- hyperbolic bias add (hyp_bias = proj(expmap0(b)) precomputed) ----
    h = _proj(_mobius_add(h, b_ref[...], c, recip=recip), c, recip=recip)

    # ---- front half of HypAgg: tangent space at the origin ----
    xt_ref[...] = _logmap0(h, c, recip=recip).astype(xt_ref.dtype)


def _agg_kernel(xt_ref, adj_ref, out_ref, rsum_ref, *, c_in, c_out, tk,
                xt_resident):
    """(i, k) tiled spmm accumulating in out_ref + fused row-degree + epilogue."""
    k = pl.program_id(1)

    @pl.when(k == 0)
    def _():
        out_ref[...] = jnp.zeros_like(out_ref)
        rsum_ref[...] = jnp.zeros_like(rsum_ref)

    a = adj_ref[...]                                   # (TMA, TKA) int8/bf16 (0/1)
    if xt_resident:
        start = pl.multiple_of(k * tk, tk)
        xt = xt_ref[pl.ds(start, tk), :]               # slice resident xt
    else:
        xt = xt_ref[...]
    out_ref[...] += jnp.dot(a.astype(jnp.bfloat16), xt,
                            preferred_element_type=jnp.float32)
    # fused row-degree accumulation (XLU reduce hides under the MXU/DMA)
    rsum_ref[...] += jnp.sum(a.astype(jnp.float32), axis=-1, keepdims=True)

    @pl.when(k == pl.num_programs(1) - 1)
    def _():
        recip = _recip_eup
        # r_inv = 1 / rowsum(adj), with 1/0 -> 0 (mirrors np.power(., -1); inf -> 0)
        rs = rsum_ref[...]
        rinv = jnp.where(rs == 0.0, 0.0,
                         pl.reciprocal(jnp.where(rs == 0.0, 1.0, rs),
                                       approx=False))
        support = rinv * out_ref[...]                  # D^-1 (A @ xt)
        s_sq = jnp.sum(support * support, axis=-1, keepdims=True)
        # HypAgg: back onto the ball
        h = _proj(_expmap0(support, c_in, u_sq=s_sq, recip=recip),
                  c_in, recip=recip)
        # HypAct: relu in tangent space, re-map with c_out (== c_in here)
        xt2 = jax.nn.relu(_logmap0(h, c_in, recip=recip))
        out_ref[...] = _proj(_expmap0(xt2, c_out, recip=recip),
                             c_out, recip=recip)


# ------------------------------- Python wrapper ---------------------------------

def _round_up(x, m):
    return ((x + m - 1) // m) * m


def _tile_geometry(N):
    """Returns (Np, TMA, TKA, TML): padded node count, agg tiles, linear tile."""
    if N <= 256:
        Np = _round_up(max(N, 8), 8)
        return Np, Np, Np, Np
    # Large agg tiles (loop is mem/overhead bound), but cap at ~Np/2 so the
    # "parallel" row axis still feeds both TensorCores on v7x.
    TMA = min(1024, _round_up((N + 1) // 2, 256))
    Np = _round_up(N, TMA)
    return Np, TMA, TMA, 256


def hgcn_forward(x, adj, weights, biases, curvatures):
    """Returns list of hyperbolic hidden representations (one per layer)."""
    N, F = x.shape
    num_layers = len(weights)
    f32, bf16 = jnp.float32, jnp.bfloat16

    Np, TMA, TKA, TML = _tile_geometry(N)
    vmem_limit = _vmem_limit_bytes()

    dims = [F] + [int(w.shape[0]) for w in weights]
    dims_p = [max(LANE, _round_up(d, LANE)) for d in dims]

    # --- zero-pad inputs (glue) ---
    x_p = jnp.zeros((Np, dims_p[0]), f32).at[:N, :F].set(x.astype(f32))

    # Adjacency lives in HBM as int8 for large graphs (0/1 entries are exact and
    # it halves the dominant HBM stream); tiny graphs keep bf16 storage.
    # TODO(synk): weighted (non-0/1) adjacency would need f32 storage here.
    adj_dtype = jnp.int8 if N > 256 else bf16
    adj_p = jnp.zeros((Np, Np), adj_dtype).at[:N, :N].set(adj.astype(adj_dtype))

    h = x_p                      # layer-0 encode is fused into the first linear kernel
    x_hidden = []
    c0 = float(curvatures[0])
    k_tiles = Np // TKA
    for li in range(num_layers):
        # module __init__ sets c_in = c_out = curvatures[li]
        c = float(curvatures[li])
        din, dout = dims[li], dims[li + 1]
        dinp, doutp = dims_p[li], dims_p[li + 1]

        wt = jnp.zeros((dinp, doutp), bf16).at[:din, :dout].set(
            jnp.transpose(weights[li]).astype(bf16))
        b_row = jnp.zeros((1, doutp), f32).at[0, :dout].set(
            biases[li].astype(f32))
        # hyp_bias is a layer constant: precompute proj(expmap0(b)) once (glue).
        hyp_b = _proj(_expmap0(b_row, c), c)

        # (1) HypLinear + bias + logmap0, tiled over rows -> xt (bf16, lane-dense)
        xt = pl.pallas_call(
            functools.partial(_linear_kernel, c=c, encode=(li == 0), c_enc=c0),
            out_shape=jax.ShapeDtypeStruct((Np, doutp), bf16),
            grid=(Np // TML,),
            in_specs=[pl.BlockSpec((TML, dinp), lambda i: (i, 0)),
                      pl.BlockSpec((dinp, doutp), lambda i: (0, 0)),
                      pl.BlockSpec((1, doutp), lambda i: (0, 0))],
            out_specs=pl.BlockSpec((TML, doutp), lambda i: (i, 0)),
            compiler_params=pltpu.CompilerParams(
                dimension_semantics=("parallel",),
                vmem_limit_bytes=vmem_limit),
        )(h, wt, hyp_b)

        # (2) aggregation: adj @ xt streamed along k, accumulated in out_ref,
        #     with fused row-degree + HypAgg/HypAct epilogue.
        xt_bytes = Np * doutp * 2
        xt_resident = (2 * xt_bytes) <= (vmem_limit // 3)
        if xt_resident:
            xt_spec = pl.BlockSpec((Np, doutp), lambda i, k: (0, 0))
        else:
            xt_spec = pl.BlockSpec((TKA, doutp), lambda i, k: (k, 0))

        if k_tiles >= 3:
            adj_spec = pl.BlockSpec((TMA, TKA), lambda i, k: (i, k),
                                    pipeline_mode=pl.Buffered(3))
        else:
            adj_spec = pl.BlockSpec((TMA, TKA), lambda i, k: (i, k))

        h = pl.pallas_call(
            functools.partial(_agg_kernel, c_in=c, c_out=c, tk=TKA,
                              xt_resident=xt_resident),
            out_shape=jax.ShapeDtypeStruct((Np, doutp), f32),
            grid=(Np // TMA, k_tiles),
            in_specs=[xt_spec, adj_spec],
            out_specs=pl.BlockSpec((TMA, doutp), lambda i, k: (i, 0)),
            scratch_shapes=[pltpu.VMEM((TMA, 1), f32)],
            compiler_params=pltpu.CompilerParams(
                dimension_semantics=("parallel", "arbitrary"),
                vmem_limit_bytes=vmem_limit),
        )(xt, adj_p)

        x_hidden.append(h[:N, :dout])
    return x_hidden


# ------------------------------------ test --------------------------------------

def _build_inputs(key, N, feat_dim, dim, num_layers, c):
    k_x, k_a, k_w = jax.random.split(key, 3)
    x = jax.random.normal(k_x, (N, feat_dim), jnp.float32) * 0.1
    a = (jax.random.uniform(k_a, (N, N)) > 0.5).astype(jnp.float32)
    adj = jnp.clip(a + a.T + jnp.eye(N, dtype=jnp.float32), 0.0, 1.0)

    # get_dim_act_curv equivalent: dims, relu acts, constant curvatures.
    dims = [feat_dim] + [dim] * num_layers
    curvatures = [c] * (num_layers + 1)

    # HypLinear params: xavier_uniform(gain=sqrt(2)) weight, zero bias.
    weights, biases = [], []
    wkeys = jax.random.split(k_w, num_layers)
    for i in range(num_layers):
        fan_in, fan_out = dims[i], dims[i + 1]
        limit = (2.0 ** 0.5) * (6.0 / (fan_in + fan_out)) ** 0.5
        w = jax.random.uniform(wkeys[i], (fan_out, fan_in), jnp.float32,
                               -limit, limit)
        weights.append(w)
        biases.append(jnp.zeros((fan_out,), jnp.float32))
    return x, adj, weights, biases, curvatures


if __name__ == "__main__":
    key = jax.random.PRNGKey(0)
    feat_dim, dim, num_layers, c = 16, 32, 2, 1.0

    ok = True
    # Exercise both the tiny single-tile path and the tiled (int8-adj) path.
    for N in (8, 300):
        x, adj, weights, biases, curvs = _build_inputs(key, N, feat_dim, dim,
                                                       num_layers, c)
        outs = hgcn_forward(x, adj, weights, biases, curvs)
        for o in outs:
            jax.block_until_ready(o)
        ok &= (len(outs) == num_layers)
        ok &= all(o.shape == (N, dim) for o in outs)
        ok &= all(bool(jnp.all(jnp.isfinite(o))) for o in outs)

    assert ok
    print("KERNEL_OK")
</pallas_src>

<mosaic_0001>
module attributes {stable_mosaic.version = 11 : i64} {
  func.func @_linear_kernel(%arg0: i32, %arg1: memref<8x128xf32, #tpu.memory_space<vmem>>, %arg2: memref<128x128xbf16, #tpu.memory_space<vmem>>, %arg3: memref<1x128xf32, #tpu.memory_space<vmem>>, %arg4: memref<8x128xbf16, #tpu.memory_space<vmem>>) attributes {dimension_semantics = [#tpu.dimension_semantics<parallel>], iteration_bounds = array<i64: 1>, scalar_prefetch = 0 : i64, scratch_operands = 0 : i64, tpu.core_type = #tpu.core_type<tc>, window_params = [{transform_indices = @transform_0, window_bounds = array<i64: 8, 128>}, {pipeline_mode = #tpu.pipeline_mode<synchronous>, transform_indices = @transform_1, window_bounds = array<i64: 128, 128>}, {pipeline_mode = #tpu.pipeline_mode<synchronous>, transform_indices = @transform_2, window_bounds = array<i64: 1, 128>}, {transform_indices = @transform_3, window_bounds = array<i64: 8, 128>}]} {
    %c0 = arith.constant 0 : index
    %c0_0 = arith.constant 0 : index
    %0 = vector.load %arg1[%c0, %c0_0] : memref<8x128xf32, #tpu.memory_space<vmem>>, vector<8x128xf32>
    %1 = arith.mulf %0, %0 : vector<8x128xf32>
    %cst = arith.constant dense<0.000000e+00> : vector<8xf32>
    %2 = vector.multi_reduction <add>, %1, %cst [1] : vector<8x128xf32> to vector<8xf32>
    %3 = vector.shape_cast %2 : vector<8xf32> to vector<8x1xf32>
    %cst_1 = arith.constant 1.000000e-30 : f32
    %4 = vector.broadcast %cst_1 : f32 to vector<8x1xf32>
    %5 = arith.maximumf %3, %4 : vector<8x1xf32>
    %6 = math.sqrt %5 : vector<8x1xf32>
    %cst_2 = arith.constant 1.000000e+00 : f32
    %7 = vector.broadcast %cst_2 : f32 to vector<8x1xf32>
    %8 = arith.mulf %7, %6 : vector<8x1xf32>
    %cst_3 = arith.constant -1.500000e+01 : f32
    %cst_4 = arith.constant 1.500000e+01 : f32
    %9 = vector.broadcast %cst_3 : f32 to vector<8x1xf32>
    %10 = arith.maximumf %9, %8 : vector<8x1xf32>
    %11 = vector.broadcast %cst_4 : f32 to vector<8x1xf32>
    %12 = arith.minimumf %11, %10 : vector<8x1xf32>
    %13 = math.tanh %12 : vector<8x1xf32>
    %cst_5 = arith.constant 1.000000e+00 : f32
    %14 = vector.broadcast %cst_5 : f32 to vector<8x1xf32>
    %15 = arith.mulf %14, %6 : vector<8x1xf32>
    %16 = tpu.reciprocal %15 : vector<8x1xf32> -> vector<8x1xf32>
    %17 = arith.mulf %13, %16 : vector<8x1xf32>
    %18 = vector.broadcast %17 : vector<8x1xf32> to vector<8x128xf32>
    %19 = arith.mulf %18, %0 : vector<8x128xf32>
    %20 = arith.mulf %19, %19 : vector<8x128xf32>
    %cst_6 = arith.constant dense<0.000000e+00> : vector<8xf32>
    %21 = vector.multi_reduction <add>, %20, %cst_6 [1] : vector<8x128xf32> to vector<8xf32>
    %22 = vector.shape_cast %21 : vector<8xf32> to vector<8x1xf32>
    %cst_7 = arith.constant 1.000000e-30 : f32
    %23 = vector.broadcast %cst_7 : f32 to vector<8x1xf32>
    %24 = arith.maximumf %22, %23 : vector<8x1xf32>
    %25 = math.sqrt %24 : vector<8x1xf32>
    %26 = tpu.reciprocal %25 : vector<8x1xf32> -> vector<8x1xf32>
    %cst_8 = arith.constant 0.995999991 : f32
    %27 = vector.broadcast %cst_8 : f32 to vector<8x1xf32>
    %28 = arith.mulf %27, %26 : vector<8x1xf32>
    %29 = vector.broadcast %28 : vector<8x1xf32> to vector<8x128xf32>
    %30 = arith.mulf %19, %29 : vector<8x128xf32>
    %cst_9 = arith.constant 0.995999991 : f32
    %31 = vector.broadcast %cst_9 : f32 to vector<8x1xf32>
    %32 = arith.cmpf ogt, %25, %31 : vector<8x1xf32>
    %33 = vector.shape_cast %32 : vector<8x1xi1> to vector<8x1xi1>
    %34 = vector.broadcast %33 : vector<8x1xi1> to vector<8x128xi1>
    %35 = arith.select %34, %30, %19 : vector<8x128xi1>, vector<8x128xf32>
    %36 = arith.mulf %35, %35 : vector<8x128xf32>
    %cst_10 = arith.constant dense<0.000000e+00> : vector<8xf32>
    %37 = vector.multi_reduction <add>, %36, %cst_10 [1] : vector<8x128xf32> to vector<8xf32>
    %38 = vector.shape_cast %37 : vector<8xf32> to vector<8x1xf32>
    %cst_11 = arith.constant 1.000000e-30 : f32
    %39 = vector.broadcast %cst_11 : f32 to vector<8x1xf32>
    %40 = arith.maximumf %38, %39 : vector<8x1xf32>
    %41 = math.sqrt %40 : vector<8x1xf32>
    %42 = arith.truncf %35 : vector<8x128xf32> to vector<8x128xbf16>
    %c0_12 = arith.constant 0 : index
    %c0_13 = arith.constant 0 : index
    %43 = vector.load %arg2[%c0_12, %c0_13] : memref<128x128xbf16, #tpu.memory_space<vmem>>, vector<128x128xbf16>
    %cst_14 = arith.constant dense<0.000000e+00> : vector<8x128xf32>
    %44 = tpu.matmul %42, %43, %cst_14 {dimension_numbers = #tpu.dot_dimension_numbers<[1], [0], [0], [1], [0, 0, 1, 1], [], []>} : vector<8x128xbf16>, vector<128x128xbf16>, vector<8x128xf32> -> vector<8x128xf32>
    %45 = arith.mulf %44, %44 : vector<8x128xf32>
    %cst_15 = arith.constant dense<0.000000e+00> : vector<8xf32>
    %46 = vector.multi_reduction <add>, %45, %cst_15 [1] : vector<8x128xf32> to vector<8xf32>
    %47 = vector.shape_cast %46 : vector<8xf32> to vector<8x1xf32>
    %cst_16 = arith.constant 1.000000e-30 : f32
    %48 = vector.broadcast %cst_16 : f32 to vector<8x1xf32>
    %49 = arith.maximumf %47, %48 : vector<8x1xf32>
    %50 = math.sqrt %49 : vector<8x1xf32>
    %51 = tpu.reciprocal %41 : vector<8x1xf32> -> vector<8x1xf32>
    %52 = arith.mulf %50, %51 : vector<8x1xf32>
    %cst_17 = arith.constant 1.000000e+00 : f32
    %53 = vector.broadcast %cst_17 : f32 to vector<8x1xf32>
    %54 = arith.mulf %53, %41 : vector<8x1xf32>
    %cst_18 = arith.constant -0.99999988 : f32
    %cst_19 = arith.constant 0.99999988 : f32
    %55 = vector.broadcast %cst_18 : f32 to vector<8x1xf32>
    %56 = arith.maximumf %55, %54 : vector<8x1xf32>
    %57 = vector.broadcast %cst_19 : f32 to vector<8x1xf32>
    %58 = arith.minimumf %57, %56 : vector<8x1xf32>
    %cst_20 = arith.constant 1.000000e+00 : f32
    %59 = vector.broadcast %cst_20 : f32 to vector<8x1xf32>
    %60 = arith.addf %59, %58 : vector<8x1xf32>
    %61 = math.log %60 : vector<8x1xf32>
    %cst_21 = arith.constant 1.000000e+00 : f32
    %62 = vector.broadcast %cst_21 : f32 to vector<8x1xf32>
    %63 = arith.subf %62, %58 : vector<8x1xf32>
    %64 = math.log %63 : vector<8x1xf32>
    %65 = arith.subf %61, %64 : vector<8x1xf32>
    %cst_22 = arith.constant 5.000000e-01 : f32
    %66 = vector.broadcast %cst_22 : f32 to vector<8x1xf32>
    %67 = arith.mulf %66, %65 : vector<8x1xf32>
    %68 = arith.mulf %52, %67 : vector<8x1xf32>
    %cst_23 = arith.constant -1.500000e+01 : f32
    %cst_24 = arith.constant 1.500000e+01 : f32
    %69 = vector.broadcast %cst_23 : f32 to vector<8x1xf32>
    %70 = arith.maximumf %69, %68 : vector<8x1xf32>
    %71 = vector.broadcast %cst_24 : f32 to vector<8x1xf32>
    %72 = arith.minimumf %71, %70 : vector<8x1xf32>
    %73 = math.tanh %72 : vector<8x1xf32>
    %cst_25 = arith.constant 1.000000e+00 : f32
    %74 = vector.broadcast %cst_25 : f32 to vector<8x1xf32>
    %75 = arith.mulf %50, %74 : vector<8x1xf32>
    %76 = tpu.reciprocal %75 : vector<8x1xf32> -> vector<8x1xf32>
    %77 = arith.mulf %73, %76 : vector<8x1xf32>
    %cst_26 = arith.constant 0.000000e+00 : f32
    %78 = vector.broadcast %cst_26 : f32 to vector<8x1xf32>
    %79 = arith.cmpf oeq, %47, %78 : vector<8x1xf32>
    %80 = vector.broadcast %77 : vector<8x1xf32> to vector<8x128xf32>
    %81 = arith.mulf %80, %44 : vector<8x128xf32>
    %cst_27 = arith.constant 0.000000e+00 : f32
    %82 = vector.shape_cast %79 : vector<8x1xi1> to vector<8x1xi1>
    %83 = vector.broadcast %82 : vector<8x1xi1> to vector<8x128xi1>
    %84 = vector.broadcast %cst_27 : f32 to vector<8x128xf32>
    %85 = arith.select %83, %84, %81 : vector<8x128xi1>, vector<8x128xf32>
    %cst_28 = arith.constant 0.000000e+00 : f32
    %86 = vector.broadcast %cst_28 : f32 to vector<8x1xf32>
    %87 = arith.cmpf oeq, %47, %86 : vector<8x1xf32>
    %88 = arith.mulf %77, %77 : vector<8x1xf32>
    %89 = arith.mulf %88, %47 : vector<8x1xf32>
    %cst_29 = arith.constant 0.000000e+00 : f32
    %90 = vector.broadcast %cst_29 : f32 to vector<8x1xf32>
    %91 = arith.select %87, %90, %89 : vector<8x1xi1>, vector<8x1xf32>
    %cst_30 = arith.constant 1.000000e-30 : f32
    %92 = vector.broadcast %cst_30 : f32 to vector<8x1xf32>
    %93 = arith.maximumf %91, %92 : vector<8x1xf32>
    %94 = math.sqrt %93 : vector<8x1xf32>
    %95 = tpu.reciprocal %94 : vector<8x1xf32> -> vector<8x1xf32>
    %cst_31 = arith.constant 0.995999991 : f32
    %96 = vector.broadcast %cst_31 : f32 to vector<8x1xf32>
    %97 = arith.mulf %96, %95 : vector<8x1xf32>
    %98 = vector.broadcast %97 : vector<8x1xf32> to vector<8x128xf32>
    %99 = arith.mulf %85, %98 : vector<8x128xf32>
    %cst_32 = arith.constant 0.995999991 : f32
    %100 = vector.broadcast %cst_32 : f32 to vector<8x1xf32>
    %101 = arith.cmpf ogt, %94, %100 : vector<8x1xf32>
    %102 = vector.shape_cast %101 : vector<8x1xi1> to vector<8x1xi1>
    %103 = vector.broadcast %102 : vector<8x1xi1> to vector<8x128xi1>
    %104 = arith.select %103, %99, %85 : vector<8x128xi1>, vector<8x128xf32>
    %c0_33 = arith.constant 0 : index
    %c0_34 = arith.constant 0 : index
    %105 = vector.load %arg3[%c0_33, %c0_34] : memref<1x128xf32, #tpu.memory_space<vmem>>, vector<1x128xf32>
    %106 = arith.mulf %104, %104 : vector<8x128xf32>
    %cst_35 = arith.constant dense<0.000000e+00> : vector<8xf32>
    %107 = vector.multi_reduction <add>, %106, %cst_35 [1] : vector<8x128xf32> to vector<8xf32>
    %108 = vector.shape_cast %107 : vector<8xf32> to vector<8x1xf32>
    %109 = arith.mulf %105, %105 : vector<1x128xf32>
    %cst_36 = arith.constant dense<0.000000e+00> : vector<1xf32>
    %110 = vector.multi_reduction <add>, %109, %cst_36 [1] : vector<1x128xf32> to vector<1xf32>
    %111 = vector.shape_cast %110 : vector<1xf32> to vector<1x1xf32>
    %112 = vector.broadcast %105 : vector<1x128xf32> to vector<8x128xf32>
    %113 = arith.mulf %104, %112 : vector<8x128xf32>
    %cst_37 = arith.constant dense<0.000000e+00> : vector<8xf32>
    %114 = vector.multi_reduction <add>, %113, %cst_37 [1] : vector<8x128xf32> to vector<8xf32>
    %115 = vector.shape_cast %114 : vector<8xf32> to vector<8x1xf32>
    %cst_38 = arith.constant 2.000000e+00 : f32
    %116 = vector.broadcast %cst_38 : f32 to vector<8x1xf32>
    %117 = arith.mulf %116, %115 : vector<8x1xf32>
    %cst_39 = arith.constant 1.000000e+00 : f32
    %118 = vector.broadcast %cst_39 : f32 to vector<8x1xf32>
    %119 = arith.addf %118, %117 : vector<8x1xf32>
    %cst_40 = arith.constant 1.000000e+00 : f32
    %120 = vector.broadcast %cst_40 : f32 to vector<1x1xf32>
    %121 = arith.mulf %120, %111 : vector<1x1xf32>
    %122 = vector.broadcast %121 : vector<1x1xf32> to vector<8x1xf32>
    %123 = arith.addf %119, %122 : vector<8x1xf32>
    %124 = vector.broadcast %123 : vector<8x1xf32> to vector<8x128xf32>
    %125 = arith.mulf %124, %104 : vector<8x128xf32>
    %cst_41 = arith.constant 1.000000e+00 : f32
    %126 = vector.broadcast %cst_41 : f32 to vector<8x1xf32>
    %127 = arith.mulf %126, %108 : vector<8x1xf32>
    %cst_42 = arith.constant 1.000000e+00 : f32
    %128 = vector.broadcast %cst_42 : f32 to vector<8x1xf32>
    %129 = arith.subf %128, %127 : vector<8x1xf32>
    %130 = vector.broadcast %129 : vector<8x1xf32> to vector<8x128xf32>
    %131 = vector.broadcast %105 : vector<1x128xf32> to vector<8x128xf32>
    %132 = arith.mulf %130, %131 : vector<8x128xf32>
    %133 = arith.addf %125, %132 : vector<8x128xf32>
    %cst_43 = arith.constant 2.000000e+00 : f32
    %134 = vector.broadcast %cst_43 : f32 to vector<8x1xf32>
    %135 = arith.mulf %134, %115 : vector<8x1xf32>
    %cst_44 = arith.constant 1.000000e+00 : f32
    %136 = vector.broadcast %cst_44 : f32 to vector<8x1xf32>
    %137 = arith.addf %136, %135 : vector<8x1xf32>
    %cst_45 = arith.constant 1.000000e+00 : f32
    %138 = vector.broadcast %cst_45 : f32 to vector<8x1xf32>
    %139 = arith.mulf %138, %108 : vector<8x1xf32>
    %140 = vector.broadcast %111 : vector<1x1xf32> to vector<8x1xf32>
    %141 = arith.mulf %139, %140 : vector<8x1xf32>
    %142 = arith.addf %137, %141 : vector<8x1xf32>
    %cst_46 = arith.constant 1.000000e-15 : f32
    %143 = vector.broadcast %cst_46 : f32 to vector<8x1xf32>
    %144 = arith.maximumf %142, %143 : vector<8x1xf32>
    %145 = tpu.reciprocal %144 : vector<8x1xf32> -> vector<8x1xf32>
    %146 = vector.broadcast %145 : vector<8x1xf32> to vector<8x128xf32>
    %147 = arith.mulf %133, %146 : vector<8x128xf32>
    %148 = arith.mulf %147, %147 : vector<8x128xf32>
    %cst_47 = arith.constant dense<0.000000e+00> : vector<8xf32>
    %149 = vector.multi_reduction <add>, %148, %cst_47 [1] : vector<8x128xf32> to vector<8xf32>
    %150 = vector.shape_cast %149 : vector<8xf32> to vector<8x1xf32>
    %cst_48 = arith.constant 1.000000e-30 : f32
    %151 = vector.broadcast %cst_48 : f32 to vector<8x1xf32>
    %152 = arith.maximumf %150, %151 : vector<8x1xf32>
    %153 = math.sqrt %152 : vector<8x1xf32>
    %154 = tpu.reciprocal %153 : vector<8x1xf32> -> vector<8x1xf32>
    %cst_49 = arith.constant 0.995999991 : f32
    %155 = vector.broadcast %cst_49 : f32 to vector<8x1xf32>
    %156 = arith.mulf %155, %154 : vector<8x1xf32>
    %157 = vector.broadcast %156 : vector<8x1xf32> to vector<8x128xf32>
    %158 = arith.mulf %147, %157 : vector<8x128xf32>
    %cst_50 = arith.constant 0.995999991 : f32
    %159 = vector.broadcast %cst_50 : f32 to vector<8x1xf32>
    %160 = arith.cmpf ogt, %153, %159 : vector<8x1xf32>
    %161 = vector.shape_cast %160 : vector<8x1xi1> to vector<8x1xi1>
    %162 = vector.broadcast %161 : vector<8x1xi1> to vector<8x128xi1>
    %163 = arith.select %162, %158, %147 : vector<8x128xi1>, vector<8x128xf32>
    %164 = arith.mulf %163, %163 : vector<8x128xf32>
    %cst_51 = arith.constant dense<0.000000e+00> : vector<8xf32>
    %165 = vector.multi_reduction <add>, %164, %cst_51 [1] : vector<8x128xf32> to vector<8xf32>
    %166 = vector.shape_cast %165 : vector<8xf32> to vector<8x1xf32>
    %cst_52 = arith.constant 1.000000e-30 : f32
    %167 = vector.broadcast %cst_52 : f32 to vector<8x1xf32>
    %168 = arith.maximumf %166, %167 : vector<8x1xf32>
    %169 = math.sqrt %168 : vector<8x1xf32>
    %cst_53 = arith.constant 1.000000e+00 : f32
    %170 = vector.broadcast %cst_53 : f32 to vector<8x1xf32>
    %171 = arith.mulf %170, %169 : vector<8x1xf32>
    %cst_54 = arith.constant -0.99999988 : f32
    %cst_55 = arith.constant 0.99999988 : f32
    %172 = vector.broadcast %cst_54 : f32 to vector<8x1xf32>
    %173 = arith.maximumf %172, %171 : vector<8x1xf32>
    %174 = vector.broadcast %cst_55 : f32 to vector<8x1xf32>
    %175 = arith.minimumf %174, %173 : vector<8x1xf32>
    %cst_56 = arith.constant 1.000000e+00 : f32
    %176 = vector.broadcast %cst_56 : f32 to vector<8x1xf32>
    %177 = arith.addf %176, %175 : vector<8x1xf32>
    %178 = math.log %177 : vector<8x1xf32>
    %cst_57 = arith.constant 1.000000e+00 : f32
    %179 = vector.broadcast %cst_57 : f32 to vector<8x1xf32>
    %180 = arith.subf %179, %175 : vector<8x1xf32>
    %181 = math.log %180 : vector<8x1xf32>
    %182 = arith.subf %178, %181 : vector<8x1xf32>
    %cst_58 = arith.constant 5.000000e-01 : f32
    %183 = vector.broadcast %cst_58 : f32 to vector<8x1xf32>
    %184 = arith.mulf %183, %182 : vector<8x1xf32>
    %185 = tpu.reciprocal %171 : vector<8x1xf32> -> vector<8x1xf32>
    %186 = arith.mulf %184, %185 : vector<8x1xf32>
    %187 = vector.broadcast %186 : vector<8x1xf32> to vector<8x128xf32>
    %188 = arith.mulf %187, %163 : vector<8x128xf32>
    %189 = arith.truncf %188 : vector<8x128xf32> to vector<8x128xbf16>
    %c0_59 = arith.constant 0 : index
    %c0_60 = arith.constant 0 : index
    %190 = vector.load %arg4[%c0_59, %c0_60] : memref<8x128xbf16, #tpu.memory_space<vmem>>, vector<8x128xbf16>
    tpu.vector_store %arg4[%c0_59, %c0_60], %189 {strides = array<i32>} : memref<8x128xbf16, #tpu.memory_space<vmem>>, vector<8x128xbf16>,
    return
  }
  func.func @transform_0(%arg0: i32) -> (i32, i32) {
    %c0_i32 = arith.constant 0 : i32
    %c0_i32_0 = arith.constant 0 : i32
    return %arg0, %c0_i32 : i32, i32
  }
  func.func @transform_1(%arg0: i32) -> (i32, i32) {
    %c0_i32 = arith.constant 0 : i32
    %c0_i32_0 = arith.constant 0 : i32
    %c0_i32_1 = arith.constant 0 : i32
    return %c0_i32, %c0_i32_0 : i32, i32
  }
  func.func @transform_2(%arg0: i32) -> (i32, i32) {
    %c0_i32 = arith.constant 0 : i32
    %c0_i32_0 = arith.constant 0 : i32
    %c0_i32_1 = arith.constant 0 : i32
    return %c0_i32, %c0_i32_0 : i32, i32
  }
  func.func @transform_3(%arg0: i32) -> (i32, i32) {
    %c0_i32 = arith.constant 0 : i32
    %c0_i32_0 = arith.constant 0 : i32
    return %arg0, %c0_i32 : i32, i32
  }
}

</mosaic_0001>

<bundles_post_ra>
// kernel: tpu_custom_call.1
= control target key start
LH: loop header
LB: loop body
LE: loop exit
PB: predicated region body
PF: predicated region fallthrough
CT: control target
= control target key end

     0   :  { %8 = vsyncpa [#allocation3], 0  ;;  %s675_s0 = inlined_call_operand.hbm [shape: f32[8,128], index: 0, kind: input, shape index: {}]   ;;  %s676_s1 = inlined_call_operand.hbm [shape: bf16[128,128], index: 1, kind: input, shape index: {}]   ;;  %s677_s2 = inlined_call_operand.vmem [shape: f32[1,128], index: 2, kind: input, shape index: {}]   ;;  %s678_s3 = inlined_call_operand.hbm [shape: bf16[8,128], index: 3, kind: output, shape index: {}]  }
   0x1   :  { %9 = vsyncpa [#allocation6], 0 }
   0x2   :  { %10 = vsyncpa [#allocation4], 0  ;;  %s16_s14 = sshll.u32 %s675_s0, 4  ;;  %s621_s15 = smov [#allocation2]   ;;  %s17_s14 = int_to_ptr.hbm [resolvable:$true] %s16_s14 }
   0x3   :  { %s18_s16 = sshll.u32 %s621_s15, 4  ;;  %s26_s19 = sshll.u32 %s676_s1, 4  ;;  %s19_s16 = int_to_ptr.vmem [resolvable:$true] %s18_s16  ;;  %s27_s19 = int_to_ptr.hbm [resolvable:$true] %s26_s19 }
   0x4   :  { %21 = dma.hbm_to_vmem [thread:$0]  %s17_s14, 128, %s19_s16, [#allocation3]  }
   0x5   :  { %s622_s20 = smov [#allocation5]   ;;  %s623_s22 = smov 64  }
   0x6   :  { %s28_s21 = sshll.u32 %s622_s20, 4  ;;  %s624_s23 = smov 4   ;;  %s29_s21 = int_to_ptr.vmem [resolvable:$true] %s28_s21 }
   0x7   :  { %34 = dma.hbm_to_vmem [thread:$0]  %s27_s19, 1024, %s29_s21, [#allocation6], %s623_s22, %s623_s22, %s624_s23  }
   0x8   :  { %615 = dma.done.wait [#allocation3], 128  }
   0x9   :  { %616 = vsyncadd [#allocation3], 4294967168 }
   0xa   :  { %617 = dma.done.wait [#allocation6], 1024  }
   0xb   :  { %618 = vsyncadd [#allocation6], 4294966272  ;;  %v45_v0 = vld [vmem:[#allocation2] sm:$0xff]  ;;  %v493_v30 = vld [vmem:[#allocation5 + $0x30] sm:$0xff]  ;;  %s440_s29 = sshll.u32 %s678_s3, 4  ;;  %s441_s29 = int_to_ptr.hbm [resolvable:$true] %s440_s29 }
   0xc   :  { %v46_v1 = vmul.f32 %v45_v0, %v45_v0  ;;  %v494_v29 = vld [vmem:[#allocation5 + $0x38] sm:$0xff]  ;;  %v492_v31 = vld [vmem:[#allocation5 + $0x28] sm:$0xff]  ;;  %v491_v32 = vld [vmem:[#allocation5 + $0x20] sm:$0xff] }
   0xd   :  { %198 = vmatpush.bf16.msra.mxu0 %v494_v29  ;;  %v490_v33 = vld [vmem:[#allocation5 + $0x18] sm:$0xff]  ;;  %v489_v34 = vld [vmem:[#allocation5 + $0x10] sm:$0xff]  ;;  %v488_v36 = vld [vmem:[#allocation5 + $0x8] sm:$0xff] }
   0xe   :  { %47 = vadd.xlane.f32.xlu0 %v46_v1  ;;  %v487_v38 = vld [vmem:[#allocation5] sm:$0xff] }
  0x11   :  { %199 = vmatpush.bf16.msra.mxu0 %v493_v30 }
  0x15   :  { %200 = vmatpush.bf16.msra.mxu0 %v492_v31 }
  0x19   :  { %201 = vmatpush.bf16.msra.mxu0 %v491_v32 }
  0x1d   :  { %202 = vmatpush.bf16.msra.mxu0 %v490_v33 }
  0x21   :  { %203 = vmatpush.bf16.msra.mxu0 %v489_v34 }
  0x25   :  { %204 = vmatpush.bf16.msra.mxu0 %v488_v36 }
  0x29   :  { %205 = vmatpush.bf16.msra.mxu0 %v487_v38 }
  0x81   :  { %v48_v2 = vpop.xlane.xlu0 %47 }
  0x82   :  { %v49_v3 = vmax.f32 %v48_v2, 1e-30 }
  0x84   :  { %501 = vrsqrt.f32 %v49_v3  ;;  %vm57_vm0 = vcmp.eq.f32.partialorder %v49_v3, inf  ;;  %v60_v11 = vand.u32 2147483648, %v49_v3  ;;  %vm59_vm1 = vcmp.eq.f32.partialorder %v49_v3, 0.0 }
  0x8a   :  { %v502_v4 = vpop.eup %501 }
  0x8b   :  { %v51_v5 = vmul.f32 %v502_v4, %v49_v3 }
  0x8d   :  { %v52_v6 = vmul.f32 %v502_v4, %v51_v5 }
  0x8f   :  { %v53_v7 = vmul.f32 0.5, %v52_v6 }
  0x91   :  { %v54_v8 = vsub.f32 1.5, %v53_v7 }
  0x93   :  { %v55_v9 = vmul.f32 %v502_v4, %v54_v8 }
  0x95   :  { %v56_v10 = vmul.f32 %v55_v9, %v49_v3 }
  0x97   :  { %v58_v12 = vsel %vm57_vm0, %v49_v3, %v56_v10 }
  0x98   :  { %v61_v13 = vsel %vm59_vm1, %v60_v11, %v58_v12 }
  0x99   :  { %503 = vrcp.f32 %v61_v13  ;;  %v451_v15 = vclamps-f32 %v61_v13, 15.0  ;;  %v76_v18 = vand.u32 2147483648, %v61_v13  ;;  %v74_v20 = vand.u32 2147483647, %v61_v13 }
  0x9a   :  { %vm70_vm3 = vweird.f32 %v61_v13 }
  0x9b   :  { %505 = vtanh.f32 %v451_v15  ;;  %v77_v22 = vor.u32 1.1754944e-38, %v76_v18  ;;  %vm75_vm5 = vcmp.eq.f32.partialorder %v74_v20, 8.507059e+37 }
  0x9f   :  { %v504_v14 = vpop.eup %503 }
  0xa0   :  { %v66_v16 = vmul.f32 %v504_v14, %v61_v13  ;;  %vm71_vm2 = vweird.f32 %v504_v14 }
  0xa1   :  { %vm72_vm4 = vmor %vm70_vm3, %vm71_vm2  ;;  %v506_v24 = vpop.eup %505 }
  0xa2   :  { %v67_v17 = vsub.f32 1.0, %v66_v16 }
  0xa4   :  { %v68_v19 = vmul.f32 %v504_v14, %v67_v17 }
  0xa6   :  { %v69_v21 = vadd.f32 %v504_v14, %v68_v19 }
  0xa8   :  { %v73_v23 = vsel %vm72_vm4, %v504_v14, %v69_v21 }
  0xa9   :  { %v78_v25 = vsel %vm75_vm5, %v77_v22, %v73_v23 }
  0xaa   :  { %v79_v26 = vmul.f32 %v506_v24, %v78_v25 }
  0xac   :  { %v80_v27 = vmul.f32 %v79_v26, %v45_v0 }
  0xae   :  { %v81_v28 = vmul.f32 %v80_v27, %v80_v27 }
  0xb0   :  { %82 = vadd.xlane.f32.xlu0 %v81_v28 }
 0x123   :  { %v83_v35 = vpop.xlane.xlu0 %82 }
 0x124   :  { %v84_v37 = vmax.f32 %v83_v35, 1e-30 }
 0x126   :  { %507 = vrsqrt.f32 %v84_v37  ;;  %vm92_vm6 = vcmp.eq.f32.partialorder %v84_v37, inf  ;;  %v95_v46 = vand.u32 2147483648, %v84_v37  ;;  %vm94_vm7 = vcmp.eq.f32.partialorder %v84_v37, 0.0 }
 0x12c   :  { %v508_v39 = vpop.eup %507 }
 0x12d   :  { %v86_v40 = vmul.f32 %v508_v39, %v84_v37 }
 0x12f   :  { %v87_v41 = vmul.f32 %v508_v39, %v86_v40 }
 0x131   :  { %v88_v42 = vmul.f32 0.5, %v87_v41 }
 0x133   :  { %v89_v43 = vsub.f32 1.5, %v88_v42 }
 0x135   :  { %v90_v44 = vmul.f32 %v508_v39, %v89_v43 }
 0x137   :  { %v91_v45 = vmul.f32 %v90_v44, %v84_v37 }
 0x139   :  { %v93_v47 = vsel %vm92_vm6, %v84_v37, %v91_v45 }
 0x13a   :  { %v96_v48 = vsel %vm94_vm7, %v95_v46, %v93_v47 }
 0x13b   :  { %509 = vrcp.f32 %v96_v48  ;;  %v108_v52 = vand.u32 2147483648, %v96_v48  ;;  %v106_v54 = vand.u32 2147483647, %v96_v48  ;;  %vm102_vm9 = vweird.f32 %v96_v48 }
 0x13c   :  { %vm113_vm12 = vcmp.gt.f32.partialorder %v96_v48, 0.996 }
 0x13d   :  { %v109_v56 = vor.u32 1.1754944e-38, %v108_v52  ;;  %vm107_vm11 = vcmp.eq.f32.partialorder %v106_v54, 8.507059e+37 }
 0x141   :  { %v510_v49 = vpop.eup %509 }
 0x142   :  { %v98_v50 = vmul.f32 %v510_v49, %v96_v48  ;;  %vm103_vm8 = vweird.f32 %v510_v49 }
 0x143   :  { %vm104_vm10 = vmor %vm102_vm9, %vm103_vm8 }
 0x144   :  { %v99_v51 = vsub.f32 1.0, %v98_v50 }
 0x146   :  { %v100_v53 = vmul.f32 %v510_v49, %v99_v51 }
 0x148   :  { %v101_v55 = vadd.f32 %v510_v49, %v100_v53 }
 0x14a   :  { %v105_v57 = vsel %vm104_vm10, %v510_v49, %v101_v55  ;;  %vm317_vm10 = vcmask 1040384  }
 0x14b   :  { %v110_v58 = vsel %vm107_vm11, %v109_v56, %v105_v57 }
 0x14c   :  { %v111_v59 = vmul.f32 0.996, %v110_v58 }
 0x14e   :  { %v112_v60 = vmul.f32 %v111_v59, %v80_v27 }
 0x150   :  { %v116_v61 = vsel %vm113_vm12, %v112_v60, %v80_v27 }
 0x151   :  { %v133_v62 = vpack.c.bf16 %v116_v61, %v116_v61  ;;  %v117_v63 = vmul.f32 %v116_v61, %v116_v61 }
 0x153   :  { %206 = vmatmul.bf16.vlgmr.msra.gmra.mxu0 %v133_v62  ;;  %118 = vadd.xlane.f32.xlu1 %v117_v63 }
 0x1c6   :  { %v119_v3 = vpop.xlane.xlu1 %118 }
 0x1c7   :  { %v120_v4 = vmax.f32 %v119_v3, 1e-30 }
 0x1c9   :  { %511 = vrsqrt.f32 %v120_v4  ;;  %vm128_vm13 = vcmp.eq.f32.partialorder %v120_v4, inf  ;;  %v131_v13 = vand.u32 2147483648, %v120_v4  ;;  %vm130_vm14 = vcmp.eq.f32.partialorder %v120_v4, 0.0 }
 0x1cf   :  { %v512_v5 = vpop.eup %511 }
 0x1d0   :  { %v652_v0 = vpop.f32.mrf.mxu0  ;;  %v122_v6 = vmul.f32 %v512_v5, %v120_v4 }
 0x1d1   :  { %v211_v1 = vmul.f32 %v652_v0, %v652_v0 }
 0x1d2   :  { %v123_v7 = vmul.f32 %v512_v5, %v122_v6 }
 0x1d3   :  { %212 = vadd.xlane.f32.xlu1 %v211_v1 }
 0x1d4   :  { %v124_v8 = vmul.f32 0.5, %v123_v7 }
 0x1d6   :  { %v125_v9 = vsub.f32 1.5, %v124_v8 }
 0x1d8   :  { %v209_v2 = vpop.f32.mrf.mxu0  ;;  %v126_v10 = vmul.f32 %v512_v5, %v125_v9 }
 0x1d9   :  { %v312_v2 = vld [vmem:[%s677_s2] sm:$0x1] }
 0x1da   :  { %v127_v11 = vmul.f32 %v126_v10, %v120_v4  ;;  %v316_v3 = vmul.f32 %v312_v2, %v312_v2 }
 0x1dc   :  { %v129_v12 = vsel %vm128_vm13, %v120_v4, %v127_v11  ;;  %v318_v5 = vsel %vm317_vm10, %v316_v3, 0.0 }
 0x1dd   :  { %v132_v14 = vsel %vm130_vm14, %v131_v13, %v129_v12  ;;  %319 = vadd.xlane.f32.xlu2 %v318_v5 }
 0x1de   :  { %513 = vrcp.f32 %v132_v14  ;;  %v484_v15 = vclamps-f32 %v132_v14, 0.9999999  ;;  %v238_v34 = vand.u32 2147483648, %v132_v14  ;;  %vm232_vm0 = vweird.f32 %v132_v14 }
 0x1df   :  { %v236_v35 = vand.u32 2147483647, %v132_v14 }
 0x1e0   :  { %v244_v19 = vadd.f32 1.0, %v484_v15  ;;  %v247_v20 = vsub.f32 1.0, %v484_v15  ;;  %v239_v40 = vor.u32 1.1754944e-38, %v238_v34 }
 0x1e1   :  { %vm237_vm3 = vcmp.eq.f32.partialorder %v236_v35, 8.507059e+37 }
 0x1e4   :  { %v514_v17 = vpop.eup %513 }
 0x1e5   :  { %v228_v21 = vmul.f32 %v514_v17, %v132_v14  ;;  %vm233_vm15 = vweird.f32 %v514_v17 }
 0x1e6   :  { %vm234_vm1 = vmor %vm232_vm0, %vm233_vm15 }
 0x1e7   :  { %v229_v22 = vsub.f32 1.0, %v228_v21 }
 0x1e9   :  { %v230_v26 = vmul.f32 %v514_v17, %v229_v22 }
 0x1eb   :  { %v231_v30 = vadd.f32 %v514_v17, %v230_v26 }
 0x1ed   :  { %v235_v37 = vsel %vm234_vm1, %v514_v17, %v231_v30 }
 0x1ee   :  { %v240_v43 = vsel %vm237_vm3, %v239_v40, %v235_v37 }
 0x246   :  { %v656_v16 = vpop.xlane.xlu1 %212 }
 0x247   :  { %v214_v18 = vmax.f32 %v656_v16, 1e-30  ;;  %vm271_vm9 = vcmp.eq.f32.partialorder %v656_v16, 0.0 }
 0x249   :  { %515 = vrsqrt.f32 %v214_v18  ;;  %vm222_vm2 = vcmp.eq.f32.partialorder %v214_v18, inf  ;;  %v225_v41 = vand.u32 2147483648, %v214_v18  ;;  %vm224_vm4 = vcmp.eq.f32.partialorder %v214_v18, 0.0 }
 0x24a   :  { %517 = vlog2.f32 %v244_v19 }
 0x24b   :  { %519 = vlog2.f32 %v247_v20 }
 0x24f   :  { %v516_v23 = vpop.eup %515 }
 0x250   :  { %v216_v24 = vmul.f32 %v516_v23, %v214_v18  ;;  %v518_v25 = vpop.eup %517 }
 0x251   :  { %v520_v28 = vpop.eup %519  ;;  %v246_v31 = vmul.f32 0.6931472, %v518_v25 }
 0x252   :  { %v217_v27 = vmul.f32 %v516_v23, %v216_v24  ;;  %v249_v32 = vmul.f32 0.6931472, %v520_v28 }
 0x254   :  { %v218_v29 = vmul.f32 0.5, %v217_v27  ;;  %v250_v38 = vsub.f32 %v246_v31, %v249_v32 }
 0x256   :  { %v219_v33 = vsub.f32 1.5, %v218_v29  ;;  %v251_v45 = vmul.f32 0.5, %v250_v38  ;;  %v500_v29 = vld [vmem:[%s677_s2] ss:$0 sm:$0xff]  ;;  %s625_s2 = smov [#allocation7]  }
 0x257   :  { %s438_s26 = sshll.u32 %s625_s2, 4  ;;  %s439_s26 = int_to_ptr.vmem [resolvable:$true] %s438_s26 }
 0x258   :  { %v220_v36 = vmul.f32 %v516_v23, %v219_v33 }
 0x25a   :  { %v221_v39 = vmul.f32 %v220_v36, %v214_v18 }
 0x25c   :  { %v223_v42 = vsel %vm222_vm2, %v214_v18, %v221_v39 }
 0x25d   :  { %v226_v44 = vsel %vm224_vm4, %v225_v41, %v223_v42 }
 0x25e   :  { %v241_v46 = vmul.f32 %v240_v43, %v226_v44  ;;  %521 = vrcp.f32 %v226_v44  ;;  %v267_v52 = vand.u32 2147483648, %v226_v44  ;;  %v265_v54 = vand.u32 2147483647, %v226_v44 }
 0x25f   :  { %vm261_vm6 = vweird.f32 %v226_v44 }
 0x260   :  { %v252_v47 = vmul.f32 %v251_v45, %v241_v46  ;;  %v268_v56 = vor.u32 1.1754944e-38, %v267_v52  ;;  %vm266_vm8 = vcmp.eq.f32.partialorder %v265_v54, 8.507059e+37 }
 0x262   :  { %v485_v49 = vclamps-f32 %v252_v47, 15.0 }
 0x264   :  { %v522_v48 = vpop.eup %521  ;;  %523 = vtanh.f32 %v485_v49 }
 0x265   :  { %v257_v50 = vmul.f32 %v522_v48, %v226_v44  ;;  %vm262_vm5 = vweird.f32 %v522_v48 }
 0x266   :  { %vm263_vm7 = vmor %vm261_vm6, %vm262_vm5 }
 0x267   :  { %v258_v51 = vsub.f32 1.0, %v257_v50 }
 0x269   :  { %v259_v53 = vmul.f32 %v522_v48, %v258_v51 }
 0x26a   :  { %v524_v58 = vpop.eup %523 }
 0x26b   :  { %v260_v55 = vadd.f32 %v522_v48, %v259_v53 }
 0x26d   :  { %v264_v57 = vsel %vm263_vm7, %v522_v48, %v260_v55 }
 0x26e   :  { %v269_v59 = vsel %vm266_vm8, %v268_v56, %v264_v57 }
 0x26f   :  { %v270_v60 = vmul.f32 %v524_v58, %v269_v59 }
 0x271   :  { %v276_v61 = vmul.f32 %v270_v60, %v270_v60  ;;  %v272_v23 = vmul.f32 %v270_v60, %v652_v0  ;;  %v320_v0 = vpop.xlane.xlu2 %319 }
 0x272   :  { %v329_v36 = vperm.slane %v320_v0, 0 }
 0x273   :  { %v277_v62 = vmul.f32 %v276_v61, %v656_v16  ;;  %v275_v28 = vsel %vm271_vm9, 0.0, %v272_v23 }
 0x275   :  { %v278_v63 = vsel %vm271_vm9, 0.0, %v277_v62 }
 0x276   :  { %v279_v1 = vmax.f32 %v278_v63, 1e-30 }
 0x278   :  { %525 = vrsqrt.f32 %v279_v1  ;;  %vm287_vm11 = vcmp.eq.f32.partialorder %v279_v1, inf  ;;  %v290_v12 = vand.u32 2147483648, %v279_v1  ;;  %vm289_vm12 = vcmp.eq.f32.partialorder %v279_v1, 0.0 }
 0x27e   :  { %v526_v4 = vpop.eup %525 }
 0x27f   :  { %v281_v6 = vmul.f32 %v526_v4, %v279_v1 }
 0x281   :  { %v282_v7 = vmul.f32 %v526_v4, %v281_v6 }
 0x283   :  { %v283_v8 = vmul.f32 0.5, %v282_v7 }
 0x285   :  { %v284_v9 = vsub.f32 1.5, %v283_v8 }
 0x287   :  { %v285_v10 = vmul.f32 %v526_v4, %v284_v9 }
 0x289   :  { %v286_v11 = vmul.f32 %v285_v10, %v279_v1 }
 0x28b   :  { %v288_v13 = vsel %vm287_vm11, %v279_v1, %v286_v11 }
 0x28c   :  { %v291_v14 = vsel %vm289_vm12, %v290_v12, %v288_v13 }
 0x28d   :  { %527 = vrcp.f32 %v291_v14  ;;  %v303_v19 = vand.u32 2147483648, %v291_v14  ;;  %v301_v21 = vand.u32 2147483647, %v291_v14  ;;  %vm297_vm14 = vweird.f32 %v291_v14 }
 0x28e   :  { %vm308_vm1 = vcmp.gt.f32.partialorder %v291_v14, 0.996 }
 0x28f   :  { %v304_v24 = vor.u32 1.1754944e-38, %v303_v19  ;;  %vm302_vm0 = vcmp.eq.f32.partialorder %v301_v21, 8.507059e+37 }
 0x293   :  { %v528_v15 = vpop.eup %527 }
 0x294   :  { %v293_v17 = vmul.f32 %v528_v15, %v291_v14  ;;  %vm298_vm13 = vweird.f32 %v528_v15 }
 0x295   :  { %vm299_vm15 = vmor %vm297_vm14, %vm298_vm13 }
 0x296   :  { %v294_v18 = vsub.f32 1.0, %v293_v17 }
 0x298   :  { %v295_v20 = vmul.f32 %v528_v15, %v294_v18 }
 0x29a   :  { %v296_v22 = vadd.f32 %v528_v15, %v295_v20 }
 0x29c   :  { %v300_v25 = vsel %vm299_vm15, %v528_v15, %v296_v22 }
 0x29d   :  { %v305_v26 = vsel %vm302_vm0, %v304_v24, %v300_v25 }
 0x29e   :  { %v306_v27 = vmul.f32 0.996, %v305_v26 }
 0x2a0   :  { %v307_v30 = vmul.f32 %v306_v27, %v275_v28 }
 0x2a2   :  { %v311_v31 = vsel %vm308_vm1, %v307_v30, %v275_v28 }
 0x2a3   :  { %v324_v32 = vmul.f32 %v500_v29, %v311_v31  ;;  %v313_v33 = vmul.f32 %v311_v31, %v311_v31 }
 0x2a5   :  { %325 = vadd.xlane.f32.xlu2 %v324_v32  ;;  %314 = vadd.xlane.f32.xlu0 %v313_v33 }
 0x318   :  { %v326_v34 = vpop.xlane.xlu2 %325  ;;  %v315_v35 = vpop.xlane.xlu0 %314 }
 0x319   :  { %v327_v37 = vmul.f32 2.0, %v326_v34  ;;  %v335_v39 = vmul.f32 %v329_v36, %v315_v35  ;;  %v332_v44 = vsub.f32 1.0, %v315_v35 }
 0x31b   :  { %v328_v38 = vadd.f32 1.0, %v327_v37  ;;  %v333_v50 = vmul.f32 %v500_v29, %v332_v44 }
 0x31d   :  { %v336_v16 = vadd.f32 %v335_v39, %v328_v38  ;;  %v330_v42 = vadd.f32 %v329_v36, %v328_v38 }
 0x31f   :  { %v337_v40 = vmax.f32 %v336_v16, 1e-15  ;;  %v331_v47 = vmul.f32 %v330_v42, %v311_v31 }
 0x321   :  { %529 = vrcp.f32 %v337_v40  ;;  %v349_v46 = vand.u32 2147483648, %v337_v40  ;;  %v347_v49 = vand.u32 2147483647, %v337_v40  ;;  %vm343_vm3 = vweird.f32 %v337_v40 }
 0x322   :  { %v334_v53 = vadd.f32 %v333_v50, %v331_v47 }
 0x323   :  { %v350_v52 = vor.u32 1.1754944e-38, %v349_v46  ;;  %vm348_vm5 = vcmp.eq.f32.partialorder %v347_v49, 8.507059e+37 }
 0x327   :  { %v530_v41 = vpop.eup %529 }
 0x328   :  { %v339_v43 = vmul.f32 %v530_v41, %v337_v40  ;;  %vm344_vm2 = vweird.f32 %v530_v41 }
 0x329   :  { %vm345_vm4 = vmor %vm343_vm3, %vm344_vm2 }
 0x32a   :  { %v340_v45 = vsub.f32 1.0, %v339_v43 }
 0x32c   :  { %v341_v48 = vmul.f32 %v530_v41, %v340_v45 }
 0x32e   :  { %v342_v51 = vadd.f32 %v530_v41, %v341_v48 }
 0x330   :  { %v346_v54 = vsel %vm345_vm4, %v530_v41, %v342_v51 }
 0x331   :  { %v351_v55 = vsel %vm348_vm5, %v350_v52, %v346_v54 }
 0x332   :  { %v352_v56 = vmul.f32 %v351_v55, %v334_v53 }
 0x334   :  { %v353_v57 = vmul.f32 %v352_v56, %v352_v56 }
 0x336   :  { %354 = vadd.xlane.f32.xlu1 %v353_v57 }
 0x3a9   :  { %v355_v58 = vpop.xlane.xlu1 %354 }
 0x3aa   :  { %v356_v59 = vmax.f32 %v355_v58, 1e-30 }
 0x3ac   :  { %531 = vrsqrt.f32 %v356_v59  ;;  %vm364_vm6 = vcmp.eq.f32.partialorder %v356_v59, inf  ;;  %v367_v4 = vand.u32 2147483648, %v356_v59  ;;  %vm366_vm7 = vcmp.eq.f32.partialorder %v356_v59, 0.0 }
 0x3b2   :  { %v532_v60 = vpop.eup %531 }
 0x3b3   :  { %v358_v61 = vmul.f32 %v532_v60, %v356_v59 }
 0x3b5   :  { %v359_v62 = vmul.f32 %v532_v60, %v358_v61 }
 0x3b7   :  { %v360_v63 = vmul.f32 0.5, %v359_v62 }
 0x3b9   :  { %v361_v1 = vsub.f32 1.5, %v360_v63 }
 0x3bb   :  { %v362_v2 = vmul.f32 %v532_v60, %v361_v1 }
 0x3bd   :  { %v363_v3 = vmul.f32 %v362_v2, %v356_v59 }
 0x3bf   :  { %v365_v5 = vsel %vm364_vm6, %v356_v59, %v363_v3 }
 0x3c0   :  { %v368_v6 = vsel %vm366_vm7, %v367_v4, %v365_v5 }
 0x3c1   :  { %533 = vrcp.f32 %v368_v6  ;;  %v380_v10 = vand.u32 2147483648, %v368_v6  ;;  %v378_v12 = vand.u32 2147483647, %v368_v6  ;;  %vm374_vm9 = vweird.f32 %v368_v6 }
 0x3c2   :  { %vm385_vm12 = vcmp.gt.f32.partialorder %v368_v6, 0.996 }
 0x3c3   :  { %v381_v14 = vor.u32 1.1754944e-38, %v380_v10  ;;  %vm379_vm11 = vcmp.eq.f32.partialorder %v378_v12, 8.507059e+37 }
 0x3c7   :  { %v534_v7 = vpop.eup %533 }
 0x3c8   :  { %v370_v8 = vmul.f32 %v534_v7, %v368_v6  ;;  %vm375_vm8 = vweird.f32 %v534_v7 }
 0x3c9   :  { %vm376_vm10 = vmor %vm374_vm9, %vm375_vm8 }
 0x3ca   :  { %v371_v9 = vsub.f32 1.0, %v370_v8 }
 0x3cc   :  { %v372_v11 = vmul.f32 %v534_v7, %v371_v9 }
 0x3ce   :  { %v373_v13 = vadd.f32 %v534_v7, %v372_v11 }
 0x3d0   :  { %v377_v15 = vsel %vm376_vm10, %v534_v7, %v373_v13 }
 0x3d1   :  { %v382_v17 = vsel %vm379_vm11, %v381_v14, %v377_v15 }
 0x3d2   :  { %v383_v18 = vmul.f32 0.996, %v382_v17 }
 0x3d4   :  { %v384_v19 = vmul.f32 %v383_v18, %v352_v56 }
 0x3d6   :  { %v388_v20 = vsel %vm385_vm12, %v384_v19, %v352_v56 }
 0x3d7   :  { %v389_v21 = vmul.f32 %v388_v20, %v388_v20 }
 0x3d9   :  { %390 = vadd.xlane.f32.xlu2 %v389_v21 }
 0x44c   :  { %v391_v22 = vpop.xlane.xlu2 %390 }
 0x44d   :  { %v392_v23 = vmax.f32 %v391_v22, 1e-30 }
 0x44f   :  { %535 = vrsqrt.f32 %v392_v23  ;;  %vm400_vm13 = vcmp.eq.f32.partialorder %v392_v23, inf  ;;  %v403_v31 = vand.u32 2147483648, %v392_v23  ;;  %vm402_vm14 = vcmp.eq.f32.partialorder %v392_v23, 0.0 }
 0x455   :  { %v536_v24 = vpop.eup %535 }
 0x456   :  { %v394_v25 = vmul.f32 %v536_v24, %v392_v23 }
 0x458   :  { %v395_v26 = vmul.f32 %v536_v24, %v394_v25 }
 0x45a   :  { %v396_v27 = vmul.f32 0.5, %v395_v26 }
 0x45c   :  { %v397_v28 = vsub.f32 1.5, %v396_v27 }
 0x45e   :  { %v398_v29 = vmul.f32 %v536_v24, %v397_v28 }
 0x460   :  { %v399_v30 = vmul.f32 %v398_v29, %v392_v23 }
 0x462   :  { %v401_v32 = vsel %vm400_vm13, %v392_v23, %v399_v30 }
 0x463   :  { %v404_v33 = vsel %vm402_vm14, %v403_v31, %v401_v32 }
 0x464   :  { %v486_v0 = vclamps-f32 %v404_v33, 0.9999999  ;;  %537 = vrcp.f32 %v404_v33  ;;  %v426_v16 = vand.u32 2147483648, %v404_v33  ;;  %v424_v43 = vand.u32 2147483647, %v404_v33 }
 0x465   :  { %vm420_vm0 = vweird.f32 %v404_v33 }
 0x466   :  { %v407_v34 = vadd.f32 1.0, %v486_v0  ;;  %v410_v35 = vsub.f32 1.0, %v486_v0  ;;  %v427_v47 = vor.u32 1.1754944e-38, %v426_v16  ;;  %vm425_vm2 = vcmp.eq.f32.partialorder %v424_v43, 8.507059e+37 }
 0x468   :  { %539 = vlog2.f32 %v407_v34 }
 0x469   :  { %541 = vlog2.f32 %v410_v35 }
 0x46a   :  { %v538_v36 = vpop.eup %537 }
 0x46b   :  { %v416_v37 = vmul.f32 %v538_v36, %v404_v33  ;;  %vm421_vm15 = vweird.f32 %v538_v36 }
 0x46c   :  { %vm422_vm1 = vmor %vm420_vm0, %vm421_vm15 }
 0x46d   :  { %v417_v38 = vsub.f32 1.0, %v416_v37 }
 0x46e   :  { %v540_v39 = vpop.eup %539 }
 0x46f   :  { %v542_v40 = vpop.eup %541  ;;  %v409_v41 = vmul.f32 0.6931472, %v540_v39  ;;  %v418_v42 = vmul.f32 %v538_v36, %v417_v38 }
 0x470   :  { %v412_v44 = vmul.f32 0.6931472, %v542_v40 }
 0x471   :  { %v419_v45 = vadd.f32 %v538_v36, %v418_v42 }
 0x472   :  { %v413_v46 = vsub.f32 %v409_v41, %v412_v44 }
 0x473   :  { %v423_v48 = vsel %vm422_vm1, %v538_v36, %v419_v45 }
 0x474   :  { %v414_v49 = vmul.f32 0.5, %v413_v46  ;;  %v428_v50 = vsel %vm425_vm2, %v427_v47, %v423_v48 }
 0x476   :  { %v429_v51 = vmul.f32 %v428_v50, %v414_v49 }
 0x478   :  { %v430_v52 = vmul.f32 %v429_v51, %v388_v20 }
 0x47a   :  { %v431_v53 = vpack.c.bf16 %v430_v52, %v430_v52 }
 0x47c   :  { %432 = vst [vmem:[#allocation7] sm:$0xf] %v431_v53 }
 0x47d   :  { %443 = dma.vmem_to_hbm [thread:$0]  %s439_s26, 64, %s441_s29, [#allocation4]  }
 0x47e   :  { %619 = dma.done.wait [#allocation4], 64  }
 0x47f   :  { %620 = vsyncadd [#allocation4], 4294967232 }
 0x480   :  { %448 = vsyncpa [#allocation3], 1 }
 0x481   :  { %449 = vsyncpa [#allocation6], 1 }
 0x482   :  { %450 = vsyncpa [#allocation4], 1 }

</bundles_post_ra>
